<compile_context>
chip_gen: v6e
topology: v6e:2x2x1
jax: 0.10.0
libtpu: 0.0.40
codegen_flags: <defaults>
</compile_context>

<pallas_src>
import jax
import jax.numpy as jnp
from jax.experimental import pallas as pl
from jax.experimental.pallas import tpu as pltpu


# ---------------------------------------------------------------------------
# Parameter construction (deterministic, synthetic)
# ---------------------------------------------------------------------------
def init_params(key, C, Cmid):
    keys = jax.random.split(key, 24)
    it = iter(keys)

    def nrm(shape, scale):
        return jax.random.normal(next(it), shape, dtype=jnp.float32) * scale

    params = {
        "w3":  nrm((C, C, 3, 3), 0.1),        # conv3x3 weight
        "b3":  nrm((C,), 0.1),                # conv3x3 bias
        "k0a": nrm((Cmid, C), 0.1),           # conv1x1-conv3x3: 1x1 weight
        "b0a": nrm((Cmid,), 0.1),
        "k1a": nrm((C, Cmid, 3, 3), 0.1),     # conv1x1-conv3x3: 3x3 weight
        "b1a": nrm((C,), 0.1),
        "w1":  nrm((C, C), 0.1),              # final conv1x1 weight
        "bc":  nrm((C,), 0.1),                # final conv1x1 bias
    }

    sobel_x = jnp.array([[1., 0., -1.], [2., 0., -2.], [1., 0., -1.]], jnp.float32)
    sobel_y = jnp.array([[1., 2., 1.], [0., 0., 0.], [-1., -2., -1.]], jnp.float32)
    lapl    = jnp.array([[0., 1., 0.], [1., -4., 1.], [0., 1., 0.]], jnp.float32)
    masks = {"sbx": sobel_x, "sby": sobel_y, "lpl": lapl}

    for nm in ("sbx", "sby", "lpl"):
        k0e   = nrm((C, C), 0.1)     # 1x1 conv weight
        b0e   = nrm((C,), 0.1)       # 1x1 conv bias
        scale = nrm((C,), 0.001)     # per-channel scale (as in module)
        bias  = nrm((C,), 0.001)     # depthwise bias
        dke   = scale[:, None, None] * masks[nm]   # effective (C,3,3) depthwise kernel
        params[nm] = (k0e, b0e, dke, bias)
    return params


# ---------------------------------------------------------------------------
# Trace-time re-parameterization (EdgeSR / ECB fold) -> single 3x3 conv
# ---------------------------------------------------------------------------
def fold_params(p, C):
    # plain conv3x3
    rk = p["w3"]                                              # (C, C, 3, 3)
    rb = p["b3"]                                              # (C,)
    # conv1x1 -> conv3x3
    rk = rk + jnp.einsum("omhw,mi->oihw", p["k1a"], p["k0a"])
    rb = rb + p["b1a"] + jnp.einsum("omhw,m->o", p["k1a"], p["b0a"])
    # edge branches (conv1x1 -> depthwise 3x3)
    for nm in ("sbx", "sby", "lpl"):
        k0e, b0e, dke, be = p[nm]
        rk = rk + dke[:, None, :, :] * k0e[:, :, None, None]
        rb = rb + be + b0e * jnp.sum(dke, axis=(1, 2))
    # final conv1x1 on x1 and the identity residual -> center tap
    rk = rk.at[:, :, 1, 1].add(p["w1"] + jnp.eye(C, dtype=jnp.float32))
    rb = rb + p["bc"]
    return rk, rb


# ---------------------------------------------------------------------------
# Pallas kernel + wrapper
# ---------------------------------------------------------------------------
def tde_block_forward(x, params):
    N, C, H, W = x.shape
    Ho, Wo = H - 2, W - 2
    HW = H * W

    rk, rb = fold_params(params, C)

    # Tap-major weights: w_taps[t] = RK[:, :, dy, dx] with t = dy*3 + dx.
    w_taps = jnp.transpose(rk, (2, 3, 0, 1)).reshape(9, C, C)   # (9, Cout, Cin)
    b2d = rb.reshape(C, 1)

    # Channel-flattened-spatial layout, (N, C, H*W): a contiguous reshape only
    # (no transpose -> no extra HBM pass). Lane axis = H*W (256, 128-multiple).
    x_cm = x.reshape(N, C, HW)

    # Sublane-align channels (no-op when C % 8 == 0).
    Cp = ((C + 7) // 8) * 8
    if Cp != C:
        x_cm = jnp.pad(x_cm, ((0, 0), (0, Cp - C), (0, 0)))
        w_taps = jnp.pad(w_taps, ((0, 0), (0, Cp - C), (0, Cp - C)))
        b2d = jnp.pad(b2d, ((0, Cp - C), (0, 0)))

    def kernel(x_ref, w_ref, b_ref, o_ref):
        # x_ref: (1, Cp, HW) VMEM, w_ref: (9, Cp, Cp) VMEM, b_ref: (Cp, 1) VMEM
        x_t = x_ref[0]                                            # (Cp, HW), lane-dense
        # tap 0 (dy=0, dx=0): no shift
        acc = jnp.dot(w_ref[0], x_t, preferred_element_type=jnp.float32)
        for t in range(1, 9):
            dy, dx = t // 3, t % 3
            off = dy * W + dx
            # shifted[p] = x[p + off]  (== jnp.roll(x, -off)); wrapped tail
            # positions are never valid outputs and get sliced in the wrapper.
            xs = pltpu.roll(x_t, HW - off, axis=1)                # XLU, lane-dense
            acc = acc + jnp.dot(w_ref[t], xs, preferred_element_type=jnp.float32)
        o_ref[0] = (acc + b_ref[...]).astype(o_ref.dtype)         # full 256-lane store

    grid = (N,)  # one image per step; >=2 parallel steps for the example batch
    # TODO: for real SR resolutions, add an H-tiled ("parallel") grid axis with a
    # 2-row halo per block and set vmem_limit_bytes (v7x VMEM = 64 MiB).
    out_flat = pl.pallas_call(
        kernel,
        out_shape=jax.ShapeDtypeStruct((N, Cp, HW), jnp.float32),
        grid=grid,
        in_specs=[pl.BlockSpec((1, Cp, HW), lambda n: (n, 0, 0)),
                  pl.BlockSpec((9, Cp, Cp), lambda n: (0, 0, 0)),
                  pl.BlockSpec((Cp, 1), lambda n: (0, 0))],
        out_specs=pl.BlockSpec((1, Cp, HW), lambda n: (n, 0, 0)),
        compiler_params=pltpu.CompilerParams(
            dimension_semantics=("parallel",)),
    )(x_cm, w_taps, b2d)

    # (N, Cp, HW) -> (N, C, Ho, Wo): flat position p = i*W + j; valid i<Ho, j<Wo.
    out = out_flat[:, :C, :].reshape(N, C, H, W)[:, :, :Ho, :Wo]
    return out


# ---------------------------------------------------------------------------
# Pure-JAX reference (for correctness check) — mirrors the PyTorch module
# ---------------------------------------------------------------------------
def _conv2d_nchw(x, w, b, groups=1):
    y = jax.lax.conv_general_dilated(
        x, w, (1, 1), "VALID",
        dimension_numbers=("NCHW", "OIHW", "NCHW"),
        feature_group_count=groups)
    return y + b[None, :, None, None]


def ref_forward(x, p):
    C = x.shape[1]
    x1 = x[:, :, 1:-1, 1:-1]
    x2 = _conv2d_nchw(x1, p["w1"][:, :, None, None], p["bc"])
    y = _conv2d_nchw(x, p["w3"], p["b3"])
    y0 = _conv2d_nchw(x, p["k0a"][:, :, None, None], p["b0a"])
    y = y + _conv2d_nchw(y0, p["k1a"], p["b1a"])
    for nm in ("sbx", "sby", "lpl"):
        k0e, b0e, dke, be = p[nm]
        ye0 = _conv2d_nchw(x, k0e[:, :, None, None], b0e)
        y = y + _conv2d_nchw(ye0, dke[:, None, :, :], be, groups=C)
    return y + x1 + x2


# ---------------------------------------------------------------------------
if __name__ == "__main__":
    key = jax.random.PRNGKey(0)
    N, C, H, W = 2, 4, 16, 16            # inp_planes == out_planes (residual add)
    depth_multiplier = 2
    Cmid = C * depth_multiplier

    kx, kp = jax.random.split(key)
    x = jax.random.normal(kx, (N, C, H, W), dtype=jnp.float32)
    params = init_params(kp, C, Cmid)

    y = tde_block_forward(x, params)
    y = jax.block_until_ready(y)

    y_ref = ref_forward(x, params)
    err = float(jnp.max(jnp.abs(y - y_ref)))
    assert y.shape == (N, C, H - 2, W - 2), y.shape
    assert jnp.allclose(y, y_ref, atol=1e-3, rtol=1e-3), f"max abs err {err}"
    print("KERNEL_OK")
</pallas_src>

<mosaic_0001>
module attributes {stable_mosaic.version = 11 : i64} {
  func.func @kernel(%arg0: i32, %arg1: memref<1x8x256xf32, #tpu.memory_space<vmem>>, %arg2: memref<9x8x8xf32, #tpu.memory_space<vmem>>, %arg3: memref<8x1xf32, #tpu.memory_space<vmem>>, %arg4: memref<1x8x256xf32, #tpu.memory_space<vmem>>) attributes {dimension_semantics = [#tpu.dimension_semantics<parallel>], iteration_bounds = array<i64: 2>, scalar_prefetch = 0 : i64, scratch_operands = 0 : i64, tpu.core_type = #tpu.core_type<tc>, window_params = [{transform_indices = @transform_0, window_bounds = array<i64: 1, 8, 256>}, {pipeline_mode = #tpu.pipeline_mode<synchronous>, transform_indices = @transform_1, window_bounds = array<i64: 9, 8, 8>}, {pipeline_mode = #tpu.pipeline_mode<synchronous>, transform_indices = @transform_2, window_bounds = array<i64: 8, 1>}, {transform_indices = @transform_3, window_bounds = array<i64: 1, 8, 256>}]} {
    %c0 = arith.constant 0 : index
    %c0_0 = arith.constant 0 : index
    %c0_1 = arith.constant 0 : index
    %0 = vector.load %arg1[%c0, %c0_0, %c0_1] : memref<1x8x256xf32, #tpu.memory_space<vmem>>, vector<1x8x256xf32>
    %1 = vector.shape_cast %0 : vector<1x8x256xf32> to vector<8x256xf32>
    %c0_2 = arith.constant 0 : index
    %c0_3 = arith.constant 0 : index
    %c0_4 = arith.constant 0 : index
    %2 = vector.load %arg2[%c0_2, %c0_3, %c0_4] : memref<9x8x8xf32, #tpu.memory_space<vmem>>, vector<1x8x8xf32>
    %3 = vector.shape_cast %2 : vector<1x8x8xf32> to vector<8x8xf32>
    %cst = arith.constant dense<0.000000e+00> : vector<8x256xf32>
    %4 = tpu.matmul %3, %1, %cst {dimension_numbers = #tpu.dot_dimension_numbers<[1], [0], [0], [1], [0, 0, 1, 1], [], []>} : vector<8x8xf32>, vector<8x256xf32>, vector<8x256xf32> -> vector<8x256xf32>
    %c255_i32 = arith.constant 255 : i32
    %5 = tpu.dynamic_rotate %1 by %c255_i32 dim 1 : vector<8x256xf32>, i32 -> vector<8x256xf32>
    %c1 = arith.constant 1 : index
    %c0_5 = arith.constant 0 : index
    %c0_6 = arith.constant 0 : index
    %6 = vector.load %arg2[%c1, %c0_5, %c0_6] : memref<9x8x8xf32, #tpu.memory_space<vmem>>, vector<1x8x8xf32>
    %7 = vector.shape_cast %6 : vector<1x8x8xf32> to vector<8x8xf32>
    %cst_7 = arith.constant dense<0.000000e+00> : vector<8x256xf32>
    %8 = tpu.matmul %7, %5, %cst_7 {dimension_numbers = #tpu.dot_dimension_numbers<[1], [0], [0], [1], [0, 0, 1, 1], [], []>} : vector<8x8xf32>, vector<8x256xf32>, vector<8x256xf32> -> vector<8x256xf32>
    %9 = arith.addf %4, %8 : vector<8x256xf32>
    %c254_i32 = arith.constant 254 : i32
    %10 = tpu.dynamic_rotate %1 by %c254_i32 dim 1 : vector<8x256xf32>, i32 -> vector<8x256xf32>
    %c2 = arith.constant 2 : index
    %c0_8 = arith.constant 0 : index
    %c0_9 = arith.constant 0 : index
    %11 = vector.load %arg2[%c2, %c0_8, %c0_9] : memref<9x8x8xf32, #tpu.memory_space<vmem>>, vector<1x8x8xf32>
    %12 = vector.shape_cast %11 : vector<1x8x8xf32> to vector<8x8xf32>
    %cst_10 = arith.constant dense<0.000000e+00> : vector<8x256xf32>
    %13 = tpu.matmul %12, %10, %cst_10 {dimension_numbers = #tpu.dot_dimension_numbers<[1], [0], [0], [1], [0, 0, 1, 1], [], []>} : vector<8x8xf32>, vector<8x256xf32>, vector<8x256xf32> -> vector<8x256xf32>
    %14 = arith.addf %9, %13 : vector<8x256xf32>
    %c240_i32 = arith.constant 240 : i32
    %15 = tpu.dynamic_rotate %1 by %c240_i32 dim 1 : vector<8x256xf32>, i32 -> vector<8x256xf32>
    %c3 = arith.constant 3 : index
    %c0_11 = arith.constant 0 : index
    %c0_12 = arith.constant 0 : index
    %16 = vector.load %arg2[%c3, %c0_11, %c0_12] : memref<9x8x8xf32, #tpu.memory_space<vmem>>, vector<1x8x8xf32>
    %17 = vector.shape_cast %16 : vector<1x8x8xf32> to vector<8x8xf32>
    %cst_13 = arith.constant dense<0.000000e+00> : vector<8x256xf32>
    %18 = tpu.matmul %17, %15, %cst_13 {dimension_numbers = #tpu.dot_dimension_numbers<[1], [0], [0], [1], [0, 0, 1, 1], [], []>} : vector<8x8xf32>, vector<8x256xf32>, vector<8x256xf32> -> vector<8x256xf32>
    %19 = arith.addf %14, %18 : vector<8x256xf32>
    %c239_i32 = arith.constant 239 : i32
    %20 = tpu.dynamic_rotate %1 by %c239_i32 dim 1 : vector<8x256xf32>, i32 -> vector<8x256xf32>
    %c4 = arith.constant 4 : index
    %c0_14 = arith.constant 0 : index
    %c0_15 = arith.constant 0 : index
    %21 = vector.load %arg2[%c4, %c0_14, %c0_15] : memref<9x8x8xf32, #tpu.memory_space<vmem>>, vector<1x8x8xf32>
    %22 = vector.shape_cast %21 : vector<1x8x8xf32> to vector<8x8xf32>
    %cst_16 = arith.constant dense<0.000000e+00> : vector<8x256xf32>
    %23 = tpu.matmul %22, %20, %cst_16 {dimension_numbers = #tpu.dot_dimension_numbers<[1], [0], [0], [1], [0, 0, 1, 1], [], []>} : vector<8x8xf32>, vector<8x256xf32>, vector<8x256xf32> -> vector<8x256xf32>
    %24 = arith.addf %19, %23 : vector<8x256xf32>
    %c238_i32 = arith.constant 238 : i32
    %25 = tpu.dynamic_rotate %1 by %c238_i32 dim 1 : vector<8x256xf32>, i32 -> vector<8x256xf32>
    %c5 = arith.constant 5 : index
    %c0_17 = arith.constant 0 : index
    %c0_18 = arith.constant 0 : index
    %26 = vector.load %arg2[%c5, %c0_17, %c0_18] : memref<9x8x8xf32, #tpu.memory_space<vmem>>, vector<1x8x8xf32>
    %27 = vector.shape_cast %26 : vector<1x8x8xf32> to vector<8x8xf32>
    %cst_19 = arith.constant dense<0.000000e+00> : vector<8x256xf32>
    %28 = tpu.matmul %27, %25, %cst_19 {dimension_numbers = #tpu.dot_dimension_numbers<[1], [0], [0], [1], [0, 0, 1, 1], [], []>} : vector<8x8xf32>, vector<8x256xf32>, vector<8x256xf32> -> vector<8x256xf32>
    %29 = arith.addf %24, %28 : vector<8x256xf32>
    %c224_i32 = arith.constant 224 : i32
    %30 = tpu.dynamic_rotate %1 by %c224_i32 dim 1 : vector<8x256xf32>, i32 -> vector<8x256xf32>
    %c6 = arith.constant 6 : index
    %c0_20 = arith.constant 0 : index
    %c0_21 = arith.constant 0 : index
    %31 = vector.load %arg2[%c6, %c0_20, %c0_21] : memref<9x8x8xf32, #tpu.memory_space<vmem>>, vector<1x8x8xf32>
    %32 = vector.shape_cast %31 : vector<1x8x8xf32> to vector<8x8xf32>
    %cst_22 = arith.constant dense<0.000000e+00> : vector<8x256xf32>
    %33 = tpu.matmul %32, %30, %cst_22 {dimension_numbers = #tpu.dot_dimension_numbers<[1], [0], [0], [1], [0, 0, 1, 1], [], []>} : vector<8x8xf32>, vector<8x256xf32>, vector<8x256xf32> -> vector<8x256xf32>
    %34 = arith.addf %29, %33 : vector<8x256xf32>
    %c223_i32 = arith.constant 223 : i32
    %35 = tpu.dynamic_rotate %1 by %c223_i32 dim 1 : vector<8x256xf32>, i32 -> vector<8x256xf32>
    %c7 = arith.constant 7 : index
    %c0_23 = arith.constant 0 : index
    %c0_24 = arith.constant 0 : index
    %36 = vector.load %arg2[%c7, %c0_23, %c0_24] : memref<9x8x8xf32, #tpu.memory_space<vmem>>, vector<1x8x8xf32>
    %37 = vector.shape_cast %36 : vector<1x8x8xf32> to vector<8x8xf32>
    %cst_25 = arith.constant dense<0.000000e+00> : vector<8x256xf32>
    %38 = tpu.matmul %37, %35, %cst_25 {dimension_numbers = #tpu.dot_dimension_numbers<[1], [0], [0], [1], [0, 0, 1, 1], [], []>} : vector<8x8xf32>, vector<8x256xf32>, vector<8x256xf32> -> vector<8x256xf32>
    %39 = arith.addf %34, %38 : vector<8x256xf32>
    %c222_i32 = arith.constant 222 : i32
    %40 = tpu.dynamic_rotate %1 by %c222_i32 dim 1 : vector<8x256xf32>, i32 -> vector<8x256xf32>
    %c8 = arith.constant 8 : index
    %c0_26 = arith.constant 0 : index
    %c0_27 = arith.constant 0 : index
    %41 = vector.load %arg2[%c8, %c0_26, %c0_27] : memref<9x8x8xf32, #tpu.memory_space<vmem>>, vector<1x8x8xf32>
    %42 = vector.shape_cast %41 : vector<1x8x8xf32> to vector<8x8xf32>
    %cst_28 = arith.constant dense<0.000000e+00> : vector<8x256xf32>
    %43 = tpu.matmul %42, %40, %cst_28 {dimension_numbers = #tpu.dot_dimension_numbers<[1], [0], [0], [1], [0, 0, 1, 1], [], []>} : vector<8x8xf32>, vector<8x256xf32>, vector<8x256xf32> -> vector<8x256xf32>
    %44 = arith.addf %39, %43 : vector<8x256xf32>
    %c0_29 = arith.constant 0 : index
    %c0_30 = arith.constant 0 : index
    %45 = vector.load %arg3[%c0_29, %c0_30] : memref<8x1xf32, #tpu.memory_space<vmem>>, vector<8x1xf32>
    %46 = vector.broadcast %45 : vector<8x1xf32> to vector<8x256xf32>
    %47 = arith.addf %44, %46 : vector<8x256xf32>
    %c0_31 = arith.constant 0 : index
    %c0_32 = arith.constant 0 : index
    %c0_33 = arith.constant 0 : index
    %48 = vector.load %arg4[%c0_31, %c0_32, %c0_33] : memref<1x8x256xf32, #tpu.memory_space<vmem>>, vector<1x8x256xf32>
    %49 = vector.shape_cast %48 : vector<1x8x256xf32> to vector<8x256xf32>
    %50 = vector.shape_cast %47 : vector<8x256xf32> to vector<1x8x256xf32>
    tpu.vector_store %arg4[%c0_31, %c0_32, %c0_33], %50 {strides = array<i32>} : memref<1x8x256xf32, #tpu.memory_space<vmem>>, vector<1x8x256xf32>,
    return
  }
  func.func @transform_0(%arg0: i32) -> (i32, i32, i32) {
    %c0_i32 = arith.constant 0 : i32
    %c0_i32_0 = arith.constant 0 : i32
    %c0_i32_1 = arith.constant 0 : i32
    return %arg0, %c0_i32, %c0_i32_0 : i32, i32, i32
  }
  func.func @transform_1(%arg0: i32) -> (i32, i32, i32) {
    %c0_i32 = arith.constant 0 : i32
    %c0_i32_0 = arith.constant 0 : i32
    %c0_i32_1 = arith.constant 0 : i32
    %c0_i32_2 = arith.constant 0 : i32
    return %c0_i32, %c0_i32_0, %c0_i32_1 : i32, i32, i32
  }
  func.func @transform_2(%arg0: i32) -> (i32, i32) {
    %c0_i32 = arith.constant 0 : i32
    %c0_i32_0 = arith.constant 0 : i32
    %c0_i32_1 = arith.constant 0 : i32
    return %c0_i32, %c0_i32_0 : i32, i32
  }
  func.func @transform_3(%arg0: i32) -> (i32, i32, i32) {
    %c0_i32 = arith.constant 0 : i32
    %c0_i32_0 = arith.constant 0 : i32
    %c0_i32_1 = arith.constant 0 : i32
    return %arg0, %c0_i32, %c0_i32_0 : i32, i32, i32
  }
}

</mosaic_0001>

<bundles_post_ra>
// kernel: tpu_custom_call.1
= control target key start
LH: loop header
LB: loop body
LE: loop exit
PB: predicated region body
PF: predicated region fallthrough
CT: control target
= control target key end

     0   :  { %8 = vsyncpa [#allocation3], 0  ;;  %s1330_s0 = inlined_call_operand.vmem [shape: f32[2,8,256], index: 0, kind: input, shape index: {}]   ;;  %s1331_s1 = inlined_call_operand.vmem [shape: f32[9,8,8], index: 1, kind: input, shape index: {}]   ;;  %s1332_s2 = inlined_call_operand.vmem [shape: f32[8,1], index: 2, kind: input, shape index: {}]   ;;  %s1333_s3 = inlined_call_operand.hbm [shape: f32[2,8,256], index: 3, kind: output, shape index: {}]  }
   0x1   :  { %10 = vsyncpa [#allocation3 + $0x1], 0  ;;  %s1185_s12 = smov 0   ;;  %s1187_s13 = smov 0  }
   0x2   :  { %s1189_s14 = smov 0   ;;  %s1191_s15 = smov 0  }
   0x3 LB: > { %s1206_s16 = sadd.s32 4294967295, %s1152_s15   ;;  %s1011_s17 = sadd.s32 4294967294, %s1152_s15   ;;  %s1152_s15 = sphi %s1191_s15, %s1339_s15   ;;  %s1148_s14 = sphi %s1189_s14, %s1338_s14   ;;  %s1144_s13 = sphi %s1187_s13, %s1337_s13   ;;  %s1140_s12 = sphi %s1185_s12, %s1336_s12  }
   0x4   : > { %s1210_s18 = sadd.s32 1, %s1152_s15   ;;  %s91_s19 = sadd.s32 1, %s1148_s14 }
   0x5   : > { %s88_s20 = ssub.s32 %s1152_s15, %s1210_s18  ;;  %p101_p0 = scmp.ne.s32.totalorder %s1148_s14, %s1144_s13 }
   0x6   : > { %p89_p1 = scmp.eq.s32.totalorder %s88_s20, 0  ;;  %p102_p2 = scmp.eq.s32.totalorder %s1206_s16, 1 }
   0x7   : > { %p107_p3 = scmp.ne.s32.totalorder %s1144_s13, %s1140_s12  ;;  %p108_p4 = scmp.eq.s32.totalorder %s1011_s17, 1 }
   0x8   : > { %s1221_s21 = scalar_select %p89_p1, %s1148_s14, %s91_s19  }
   0x9   : > { %p1223_p5 = por %p102_p2, %p101_p0  ;;  %p1227_p6 = por %p108_p4, %p107_p3 }
   0xa   : > { %p1014_p7 = scmp.ge.s32.totalorder %s1152_s15, 1  ;;  %p140_p8 = scmp.lt.s32.totalorder %s1152_s15, 3 }
   0xc   : > { %p141_p9 = pnand %p1014_p7, %p140_p8 }
   0xd   : > { %p164_p10 = scmp.lt.s32.totalorder (!%p141_p9), %s1206_s16, 1  ;;  %s1155_s29 = smov (!%p141_p9), 126  }
   0xe   : > { %144 = sbr.rel (%p141_p9) target bundleno = 382 (0x17e), region = 32  ;;  %s1156_s30 = smov (!%p141_p9), 127  }
   0xf   : > { %s1157_s6 = smov (!%p141_p9), 112   ;;  %s1158_s7 = smov (!%p141_p9), 111  }
  0x10   : > { %s1159_s8 = smov (!%p141_p9), 110   ;;  %s1161_s9 = smov (!%p141_p9), 96  }
  0x11   : > { %s1162_s10 = smov (!%p141_p9), 95   ;;  %s1163_s11 = smov (!%p141_p9), 94  }
  0x12   : > { %s161_s17 = sand.u32 (!%p141_p9), 1, %s1144_s13   ;;  %s1041_s20 = sshll.u32 (!%p141_p9), %s1206_s16, 8 }
  0x13   : > { %v1154_v0 = vmov 0.0   ;;  %s165_s24 = scalar_select %p164_p10, %s1206_s16, 1  ;;  %v171_v3 = vld [vmem:[%s1331_s1] sm:$0xff]  ;;  %vm183_vm0 = vcmask 64512   ;;  %v1160_v4 = vmov 0   ;;  %v176_v6 = vlaneseq  ;;  %v1018_v14 = vld [vmem:[%s1331_s1 + $0x8] sm:$0xff] }
  0x14   : > { %251 = vmatprep.mubr.f32.mxu0 %v1154_v0  ;;  %325 = vmatprep.mubr.f32.mxu1 %v1154_v0  ;;  %v927_v5 = vld [vmem:[%s1332_s2] sm:$0xff]  ;;  %v1021_v21 = vld [vmem:[%s1331_s1 + $0x10] sm:$0xff]  ;;  %v1023_v22 = vld [vmem:[%s1331_s1 + $0x18] sm:$0xff]  ;;  %s1015_s19 = sshll.u32 %s161_s17, 4  ;;  %s1164_s4 = smov [#allocation2]  }
  0x15   : > { %s1040_s25 = sshll.u32 %s165_s24, 4  ;;  %1091 = vset.pattern.permute.xlu0 %v1160_v4  ;;  %v1248_v7 = vand.u32 127, %v176_v6  ;;  %v1025_v27 = vld [vmem:[%s1331_s1 + $0x20] sm:$0xff]  ;;  %v1027_v32 = vld [vmem:[%s1331_s1 + $0x28] sm:$0xff]  ;;  %v1029_v37 = vld [vmem:[%s1331_s1 + $0x30] sm:$0xff]  ;;  %s163_s24 = scalar_lea.vmem [#allocation2], %s1015_s19 }
  0x16   : > { %s168_s28 = scalar_lea.vmem %s1330_s0, %s1040_s25  ;;  %v1031_v42 = vld [vmem:[%s1331_s1 + $0x38] sm:$0xff]  ;;  %v1033_v47 = vld [vmem:[%s1331_s1 + $0x40] sm:$0xff]  ;;  %s952_s25 = sshll.u32 %s163_s24, 4  ;;  %s953_s25 = int_to_ptr.vmem [resolvable:$true] %s952_s25 }
  0x17   : > { %v169_v1 = vld [vmem:[%s168_s28] sm:$0xff]  ;;  %v170_v2 = vld [vmem:[%s168_s28 + $0x8] sm:$0xff]  ;;  %vm178_vm1 = vcmp.lt.s32.totalorder %v1248_v7, 127  ;;  %vm336_vm2 = vcmp.lt.s32.totalorder %v1248_v7, 126  ;;  %vm421_vm3 = vcmp.lt.s32.totalorder %v1248_v7, 112  ;;  %vm506_vm4 = vcmp.lt.s32.totalorder %v1248_v7, 111  ;;  %s950_s28 = scalar_lea.hbm %s1333_s3, %s1041_s20 }
  0x18   : > { %332 = vrot.lane.b32.xlu1 %v169_v1, %s1155_s29  ;;  %172 = vrot.lane.b32.xlu0 %v169_v1, %s1156_s30  ;;  %vm591_vm5 = vcmp.lt.s32.totalorder %v1248_v7, 110  ;;  %vm676_vm6 = vcmp.lt.s32.totalorder %v1248_v7, 96  ;;  %vm761_vm7 = vcmp.lt.s32.totalorder %v1248_v7, 95  ;;  %vm846_vm8 = vcmp.lt.s32.totalorder %v1248_v7, 94  ;;  %s1096_s16 = sshll.u32 %s1164_s4, 4  ;;  %s1097_s16 = int_to_ptr.vmem [resolvable:$false] %s1096_s16 }
  0x19   : > { %291 = vmatprep.subr.mxu1 %v170_v2  ;;  %s1098_s5 = scalar_lea.vmem %s1097_s16, 512  ;;  %p1099_p0 = scmp.lt.s32.totalorder %s953_s25, %s1097_s16 }
  0x1a   : > { %292 = vmatpush1.msra.mxu1 %v169_v1 }
  0x1b   : > { %1020 = vmatmul.mubr.msk.f32.vlgmr.msra.gmra.mxu1 %vm183_vm0, %v171_v3 }
  0x1c   : > { %334 = vrot.lane.b32.xlu1 %v170_v2, %s1155_s29  ;;  %174 = vrot.lane.b32.xlu0 %v170_v2, %s1156_s30  ;;  %s938_s29 = scalar_lea.sflag [#allocation3], %s161_s17  ;;  %s1092_s30 = scalar_lea.vmem %s953_s25, 256 }
  0x1d   : > { %493 = vmatprep.mubr.f32.mxu1 %v1154_v0  ;;  %p1093_p11 = scmp.ne.s32.totalorder %s953_s25, %s1092_s30  ;;  %p1100_p1 = scmp.lt.s32.totalorder %s1098_s5, %s1092_s30 }
  0x1f   : > { %p1094_p12 = pnand %p1093_p11, %p1223_p5  ;;  %p1101_p2 = por %p1100_p1, %p1099_p0 }
  0x20   : > { %419 = vrot.lane.b32.xlu1 %v170_v2, %s1157_s6  ;;  %417 = vrot.lane.b32.xlu0 %v169_v1, %s1157_s6 }
  0x21   : > { %p1095_p13 = pneg %p1094_p12 }
  0x23   : > { %p1102_p3 = pnand %p1101_p2, %p1095_p13 }
  0x24   : > { %504 = vrot.lane.b32.xlu1 %v170_v2, %s1158_s7  ;;  %502 = vrot.lane.b32.xlu0 %v169_v1, %s1158_s7 }
  0x28   : > { %589 = vrot.lane.b32.xlu1 %v170_v2, %s1159_s8  ;;  %587 = vrot.lane.b32.xlu0 %v169_v1, %s1159_s8 }
  0x2c   : > { %674 = vrot.lane.b32.xlu1 %v170_v2, %s1161_s9  ;;  %672 = vrot.lane.b32.xlu0 %v169_v1, %s1161_s9 }
  0x30   : > { %759 = vrot.lane.b32.xlu1 %v170_v2, %s1162_s10  ;;  %757 = vrot.lane.b32.xlu0 %v169_v1, %s1162_s10 }
  0x34   : > { %844 = vrot.lane.b32.xlu1 %v170_v2, %s1163_s11  ;;  %842 = vrot.lane.b32.xlu0 %v169_v1, %s1163_s11 }
  0x38   : > { %930 = vperm.xlu0 %1091, %v927_v5  }
  0x8a   : > { %v333_v8 = vpop.permute.xlu1 %332  ;;  %v173_v9 = vpop.permute.xlu0 %172 }
  0x8e   : > { %v335_v10 = vpop.permute.xlu1 %334  ;;  %v175_v11 = vpop.permute.xlu0 %174 }
  0x8f   : > { %v180_v12 = vsel %vm178_vm1, %v175_v11, %v173_v9  ;;  %v179_v13 = vsel %vm178_vm1, %v173_v9, %v175_v11  ;;  %v338_v15 = vsel %vm336_vm2, %v335_v10, %v333_v8  ;;  %v337_v16 = vsel %vm336_vm2, %v333_v8, %v335_v10 }
  0x90   : > { %217 = vmatprep.subr.mxu0 %v180_v12 }
  0x91   : > { %218 = vmatpush1.msra.mxu0 %v179_v13 }
  0x92   : > { %v420_v17 = vpop.permute.xlu1 %419  ;;  %374 = vmatprep.subr.mxu0 %v338_v15  ;;  %v418_v18 = vpop.permute.xlu0 %417  ;;  %1019 = vmatmul.mubr.msk.f32.vlgmr.msra.gmra.mxu0 %vm183_vm0, %v1018_v14 }
  0x93   : > { %v422_v19 = vsel %vm421_vm3, %v418_v18, %v420_v17  ;;  %375 = vmatpush1.msra.mxu0 %v337_v16  ;;  %v423_v20 = vsel %vm421_vm3, %v420_v17, %v418_v18  ;;  %408 = vmatprep.mubr.f32.mxu0 %v1154_v0 }
  0x94   : > { %459 = vmatprep.subr.mxu1 %v423_v20 }
  0x95   : > { %460 = vmatpush1.msra.mxu1 %v422_v19 }
  0x96   : > { %v505_v23 = vpop.permute.xlu1 %504  ;;  %v503_v24 = vpop.permute.xlu0 %502  ;;  %1022 = vmatmul.mubr.msk.f32.vlgmr.msra.gmra.mxu0 %vm183_vm0, %v1021_v21  ;;  %1024 = vmatmul.mubr.msk.f32.vlgmr.msra.gmra.mxu1 %vm183_vm0, %v1023_v22 }
  0x97   : > { %v507_v25 = vsel %vm506_vm4, %v503_v24, %v505_v23  ;;  %v508_v26 = vsel %vm506_vm4, %v505_v23, %v503_v24  ;;  %578 = vmatprep.mubr.f32.mxu0 %v1154_v0  ;;  %663 = vmatprep.mubr.f32.mxu1 %v1154_v0 }
  0x98   : > { %544 = vmatprep.subr.mxu0 %v508_v26 }
  0x99   : > { %545 = vmatpush1.msra.mxu0 %v507_v25 }
  0x9a   : > { %v590_v28 = vpop.permute.xlu1 %589  ;;  %v588_v29 = vpop.permute.xlu0 %587  ;;  %1026 = vmatmul.mubr.msk.f32.vlgmr.msra.gmra.mxu0 %vm183_vm0, %v1025_v27 }
  0x9b   : > { %v592_v30 = vsel %vm591_vm5, %v588_v29, %v590_v28  ;;  %v593_v31 = vsel %vm591_vm5, %v590_v28, %v588_v29  ;;  %748 = vmatprep.mubr.f32.mxu0 %v1154_v0 }
  0x9c   : > { %629 = vmatprep.subr.mxu1 %v593_v31 }
  0x9d   : > { %630 = vmatpush1.msra.mxu1 %v592_v30 }
  0x9e   : > { %v675_v33 = vpop.permute.xlu1 %674  ;;  %v673_v34 = vpop.permute.xlu0 %672  ;;  %1028 = vmatmul.mubr.msk.f32.vlgmr.msra.gmra.mxu1 %vm183_vm0, %v1027_v32 }
  0x9f   : > { %v677_v35 = vsel %vm676_vm6, %v673_v34, %v675_v33  ;;  %v678_v36 = vsel %vm676_vm6, %v675_v33, %v673_v34  ;;  %833 = vmatprep.mubr.f32.mxu1 %v1154_v0 }
  0xa0   : > { %714 = vmatprep.subr.mxu0 %v678_v36 }
  0xa1   : > { %715 = vmatpush1.msra.mxu0 %v677_v35 }
  0xa2   : > { %v760_v38 = vpop.permute.xlu1 %759  ;;  %v758_v39 = vpop.permute.xlu0 %757  ;;  %1030 = vmatmul.mubr.msk.f32.vlgmr.msra.gmra.mxu0 %vm183_vm0, %v1029_v37 }
  0xa3   : > { %v762_v40 = vsel %vm761_vm7, %v758_v39, %v760_v38  ;;  %v763_v41 = vsel %vm761_vm7, %v760_v38, %v758_v39  ;;  %918 = vmatprep.mubr.f32.mxu0 %v1154_v0 }
  0xa4   : > { %799 = vmatprep.subr.mxu1 %v763_v41 }
  0xa5   : > { %800 = vmatpush1.msra.mxu1 %v762_v40 }
  0xa6   : > { %v845_v43 = vpop.permute.xlu1 %844  ;;  %v843_v44 = vpop.permute.xlu0 %842  ;;  %1032 = vmatmul.mubr.msk.f32.vlgmr.msra.gmra.mxu1 %vm183_vm0, %v1031_v42 }
  0xa7   : > { %v847_v45 = vsel %vm846_vm8, %v843_v44, %v845_v43  ;;  %v848_v46 = vsel %vm846_vm8, %v845_v43, %v843_v44 }
  0xa8   : > { %884 = vmatprep.subr.mxu0 %v848_v46 }
  0xa9   : > { %885 = vmatpush1.msra.mxu0 %v847_v45 }
  0xaa   : > { %1034 = vmatmul.mubr.msk.f32.vlgmr.msra.gmra.mxu0 %vm183_vm0, %v1033_v47 }
  0xb3   : > { %v931_v14 = vpop.permute.xlu0 %930 }
  0xdb   : > { %v327_v48 = vpop.f32.mrf.mxu1 }
  0xdd   : > { %v329_v50 = vpop.f32.mrf.mxu1 }
 0x152   : > { %v253_v49 = vpop.f32.mrf.mxu0 }
 0x153   : > { %v328_v51 = vadd.f32 %v327_v48, %v253_v49 }
 0x154   : > { %v255_v52 = vpop.f32.mrf.mxu0 }
 0x155   : > { %v330_v53 = vadd.f32 %v329_v50, %v255_v52 }
 0x156   : > { %v410_v54 = vpop.f32.mrf.mxu0  ;;  %v495_v55 = vpop.f32.mrf.mxu1 }
 0x157   : > { %v415_v56 = vadd.f32 %v410_v54, %v328_v51 }
 0x158   : > { %v412_v57 = vpop.f32.mrf.mxu0  ;;  %v497_v60 = vpop.f32.mrf.mxu1 }
 0x159   : > { %v416_v58 = vadd.f32 %v412_v57, %v330_v53  ;;  %v500_v59 = vadd.f32 %v495_v55, %v415_v56 }
 0x15a   : > { %v580_v61 = vpop.f32.mrf.mxu0 }
 0x15b   : > { %v501_v62 = vadd.f32 %v497_v60, %v416_v58  ;;  %v585_v63 = vadd.f32 %v580_v61, %v500_v59 }
 0x15c   : > { %v582_v0 = vpop.f32.mrf.mxu0 }
 0x15d   : > { %v586_v2 = vadd.f32 %v582_v0, %v501_v62 }
 0x15e   : > { %v665_v1 = vpop.f32.mrf.mxu1 }
 0x15f   : > { %v670_v3 = vadd.f32 %v665_v1, %v585_v63 }
 0x160   : > { %v667_v4 = vpop.f32.mrf.mxu1 }
 0x161   : > { %v671_v6 = vadd.f32 %v667_v4, %v586_v2 }
 0x162   : > { %v750_v5 = vpop.f32.mrf.mxu0 }
 0x163   : > { %v755_v7 = vadd.f32 %v750_v5, %v670_v3 }
 0x164   : > { %v752_v8 = vpop.f32.mrf.mxu0 }
 0x165   : > { %v756_v11 = vadd.f32 %v752_v8, %v671_v6 }
 0x166   : > { %v835_v9 = vpop.f32.mrf.mxu1 }
 0x167   : > { %v840_v12 = vadd.f32 %v835_v9, %v755_v7 }
 0x168   : > { %v837_v10 = vpop.f32.mrf.mxu1 }
 0x169   : > { %v841_v15 = vadd.f32 %v837_v10, %v756_v11 }
 0x16a   : > { %v920_v13 = vpop.f32.mrf.mxu0 }
 0x16b   : > { %v925_v16 = vadd.f32 %v920_v13, %v840_v12 }
 0x16c   : > { %v922_v17 = vpop.f32.mrf.mxu0 }
 0x16d   : > { %v926_v18 = vadd.f32 %v922_v17, %v841_v15  ;;  %v933_v19 = vadd.f32 %v931_v14, %v925_v16 }
 0x16f   : > { %v934_v20 = vadd.f32 %v931_v14, %v926_v18  ;;  %935 = vst [vmem:[%s163_s24] sm:$0xff] %v933_v19 }
 0x171   : > { %936 = vst [vmem:[%s163_s24 + $0x8] sm:$0xff] %v934_v20 }
 0x172   : > { %1105 = shalt.err (!%p1102_p3)
}
 0x173   : > { %s1106_s6 = scalar_lea.hbm %s950_s28, 256  ;;  %s1110_s9 = scalar_lea.hbm %s1333_s3, 512 }
 0x174   : > { %p1107_p4 = scmp.ne.s32.totalorder %s950_s28, %s1106_s6  ;;  %p1111_p9 = scmp.lt.s32.totalorder %s950_s28, %s1333_s3 }
 0x175   : > { %p1112_p10 = scmp.lt.s32.totalorder %s1110_s9, %s1106_s6 }
 0x176   : > { %p1108_p7 = pnand %p1107_p4, %p1223_p5 }
 0x177   : > { %p1113_p11 = por %p1112_p10, %p1111_p9 }
 0x178   : > { %p1109_p8 = pneg %p1108_p7 }
 0x17a   : > { %p1114_p12 = pnand %p1113_p11, %p1109_p8 }
 0x17c   : > { %1117 = shalt.err (!%p1114_p12)
}
 0x17d   : > { %1042 = dma.vmem_to_hbm [thread:$0]  (%p1223_p5), %s953_s25, 256, %s950_s28, %s938_s29  }
 0x17e PF: > { %p1048_p13 = scmp.ge.s32.totalorder %s1152_s15, 2  ;;  %s964_s17 = sand.u32 1, %s1140_s12  }
 0x17f   : > { %s965_s19 = scalar_lea.sflag [#allocation3], %s964_s17 }
 0x180   : > { %p1045_p0 = pnand %p1048_p13, %p1227_p6 }
 0x182   : > { %p1046_p1 = pneg %p1045_p0 }
 0x184   : > { %1135 = dma.done.wait (%p1046_p1), %s965_s19, 256  }
 0x185   : > { %1137 = vsyncadd (%p1046_p1), %s965_s19, 4294967040  ;;  %p13_p2 = scmp.ge.s32.totalorder %s1210_s18, 4   ;;  %s1336_s12 = smov %s1144_s13 }
 0x186   : > { %s1337_s13 = smov %s1148_s14  ;;  %s1338_s14 = smov %s1221_s21 }
 0x187   : > { %s1339_s15 = smov %s1210_s18  ;;  %15 = sbr.rel (!%p13_p2) target bundleno = 3 (0x3), region = 75 }
 0x18c   :  { %970 = vsyncpa [#allocation3], 1 }
 0x18d   :  { %972 = vsyncpa [#allocation3 + $0x1], 1 }

</bundles_post_ra>
